<compile_context>
chip_gen: v7x
topology: tpu7x:2x2x1
jax: 0.10.0
libtpu: 0.0.40
codegen_flags: <defaults>
</compile_context>

<pallas_src>
import functools

import jax
import jax.numpy as jnp
from jax.experimental import pallas as pl
from jax.experimental.pallas import tpu as pltpu

# ----------------------------- config -----------------------------
L = 4
N = L ** 3                      # 64
NET_DEPTH = 3
NET_WIDTH = 2
HIDDEN = NET_WIDTH * N          # 128
BIAS = True
X_HAT_CLIP = 0.0                # falsy -> no clipping branch
BATCH = 16
OUT_PAD = 128                   # layer-3 output padded to a full lane width


# ----------------------------- masks ------------------------------
def masked_linear_mask(in_channels, out_channels, n, exclusive):
    base = jnp.ones((n, n), dtype=jnp.float32)
    if exclusive:
        base = 1.0 - jnp.triu(base)          # strictly lower triangular
    else:
        base = jnp.tril(base)                # lower triangular incl. diag
    # cat along dim=1 (in_channels copies), then dim=0 (out_channels copies)
    return jnp.tile(base, (out_channels, in_channels))   # (oc*n, ic*n)


def init_masked_linear(key, in_channels, out_channels, n, exclusive):
    mask = masked_linear_mask(in_channels, out_channels, n, exclusive)
    out_f, in_f = out_channels * n, in_channels * n
    kw, kb = jax.random.split(key)
    # deterministic synthetic init (not a checkpoint load)
    w = jax.random.normal(kw, (out_f, in_f), dtype=jnp.float32) * (1.0 / jnp.sqrt(in_f))
    scale = jnp.sqrt(mask.size / mask.sum())
    w = w * mask * scale
    b = (jax.random.normal(kb, (out_f,), dtype=jnp.float32) * 0.01) if BIAS \
        else jnp.zeros((out_f,), dtype=jnp.float32)
    return w, b, mask


# ----------------------------- kernel -----------------------------
def made3d_kernel(x_ref, w1_ref, w2_ref, w3_ref, p_ref, o_ref):
    """Single-block forward: whole batch, pre-masked transposed weights.

    p_ref rows: 0=b1, 1=a1, 2=b2, 3=a2, 4=b3 (zero-padded to OUT_PAD lanes).
    """
    x = x_ref[...]                                            # (B, N)

    b1 = p_ref[0:1, :]                                        # (1, HIDDEN)
    a1 = p_ref[1:2, :]
    b2 = p_ref[2:3, :]
    a2 = p_ref[3:4, :]
    b3 = p_ref[4:5, :]                                        # (1, OUT_PAD)

    # layer 1: MaskedLinear(1 -> width, exclusive=True); mask pre-folded
    h = jnp.dot(x, w1_ref[...], preferred_element_type=jnp.float32) + b1
    h = jnp.where(h > 0, h, a1 * h)                           # PReLU (init 0.5)

    # layer 2: MaskedLinear(width -> width, exclusive=False)
    h = jnp.dot(h, w2_ref[...], preferred_element_type=jnp.float32) + b2
    h = jnp.where(h > 0, h, a2 * h)                           # PReLU

    # layer 3: MaskedLinear(width -> 1), padded to OUT_PAD lanes
    h = jnp.dot(h, w3_ref[...], preferred_element_type=jnp.float32) + b3

    # Sigmoid; padded lanes carry sigmoid(0)=0.5 and are sliced off outside.
    o_ref[...] = jax.nn.sigmoid(h)


@functools.partial(jax.jit, static_argnames=())
def made3d_forward(x, params):
    """x: (B, 1, L, L, L) float32 -> x_hat: (B, 1, L, L, L)."""
    (w1, b1, m1), a1, (w2, b2, m2), a2, (w3, b3, m3) = params
    B = x.shape[0]
    x2d = x.reshape(B, N)

    # Fold masks into weights outside the kernel and pre-transpose
    # (out,in) -> (in,out) so the hot path is x @ W_T.
    w1m = (m1 * w1).T                                   # (N, HIDDEN)
    w2m = (m2 * w2).T                                   # (HIDDEN, HIDDEN)
    w3m = (m3 * w3).T                                   # (HIDDEN, N)
    # Pad layer-3 output features to a full 128-lane store.
    w3m = jnp.pad(w3m, ((0, 0), (0, OUT_PAD - N)))      # (HIDDEN, OUT_PAD)
    b3p = jnp.pad(b3, (0, OUT_PAD - N))                 # (OUT_PAD,)

    # Pack the five tiny per-feature params into one (8, OUT_PAD) tile.
    packed = jnp.zeros((8, OUT_PAD), dtype=jnp.float32)
    packed = packed.at[0, :HIDDEN].set(b1)
    packed = packed.at[1, :HIDDEN].set(a1)
    packed = packed.at[2, :HIDDEN].set(b2)
    packed = packed.at[3, :HIDDEN].set(a2)
    packed = packed.at[4, :].set(b3p)

    full = lambda shape: pl.BlockSpec(shape, lambda i: (0, 0))

    out_pad = pl.pallas_call(
        made3d_kernel,
        out_shape=jax.ShapeDtypeStruct((B, OUT_PAD), jnp.float32),
        grid_spec=pltpu.PrefetchScalarGridSpec(
            num_scalar_prefetch=0,
            grid=(1,),                                  # single step: whole batch
            in_specs=[
                full((B, N)),                           # x (full array)
                full((N, HIDDEN)),                      # masked w1^T
                full((HIDDEN, HIDDEN)),                 # masked w2^T
                full((HIDDEN, OUT_PAD)),                # masked, padded w3^T
                full((8, OUT_PAD)),                     # packed biases/slopes
            ],
            out_specs=pl.BlockSpec((B, OUT_PAD), lambda i: (0, 0)),
        ),
        compiler_params=pltpu.CompilerParams(
            dimension_semantics=("arbitrary",)),
    )(x2d, w1m, w2m, w3m, packed)

    x_hat = out_pad[:, :N].reshape(B, 1, L, L, L)
    if X_HAT_CLIP:
        # TODO(synk): straight-through clamp (no-grad delta) — fwd value only here
        x_hat = jnp.clip(x_hat, X_HAT_CLIP, 1.0 - X_HAT_CLIP)
    return x_hat


# -------------------------- pure-JAX reference --------------------------
def made3d_reference(x, params):
    (w1, b1, m1), a1, (w2, b2, m2), a2, (w3, b3, m3) = params
    B = x.shape[0]
    h = x.reshape(B, N)
    h = h @ (m1 * w1).T + b1
    h = jnp.where(h > 0, h, a1 * h)
    h = h @ (m2 * w2).T + b2
    h = jnp.where(h > 0, h, a2 * h)
    h = h @ (m3 * w3).T + b3
    h = jax.nn.sigmoid(h)
    return h.reshape(B, 1, L, L, L)


# ------------------------------ main ------------------------------
if __name__ == "__main__":
    key = jax.random.PRNGKey(0)
    k_in, k1, k2, k3 = jax.random.split(key, 4)

    # parameters (deterministic, synthetic)
    lin1 = init_masked_linear(k1, 1, NET_WIDTH, N, exclusive=True)    # (HIDDEN, N)
    a1 = jnp.full((HIDDEN,), 0.5, dtype=jnp.float32)                  # PReLU init=0.5
    lin2 = init_masked_linear(k2, NET_WIDTH, NET_WIDTH, N, exclusive=False)
    a2 = jnp.full((HIDDEN,), 0.5, dtype=jnp.float32)
    lin3 = init_masked_linear(k3, NET_WIDTH, 1, N, exclusive=False)   # (N, HIDDEN)
    params = (lin1, a1, lin2, a2, lin3)

    # input spins in {-1, +1}, shape (B, 1, L, L, L)
    x = (jax.random.bernoulli(k_in, 0.5, (BATCH, 1, L, L, L)).astype(jnp.float32)
         * 2.0 - 1.0)

    out = made3d_forward(x, params)
    out = jax.block_until_ready(out)

    ref = made3d_reference(x, params)
    assert out.shape == (BATCH, 1, L, L, L)
    assert jnp.allclose(out, ref, atol=1e-5, rtol=1e-5)

    print("KERNEL_OK")
</pallas_src>

<mosaic_0001>
module attributes {stable_mosaic.version = 11 : i64} {
  func.func @made3d_kernel(%arg0: i32, %arg1: memref<16x64xf32, #tpu.memory_space<vmem>>, %arg2: memref<64x128xf32, #tpu.memory_space<vmem>>, %arg3: memref<128x128xf32, #tpu.memory_space<vmem>>, %arg4: memref<128x128xf32, #tpu.memory_space<vmem>>, %arg5: memref<8x128xf32, #tpu.memory_space<vmem>>, %arg6: memref<16x128xf32, #tpu.memory_space<vmem>>) attributes {dimension_semantics = [#tpu.dimension_semantics<arbitrary>], iteration_bounds = array<i64: 1>, scalar_prefetch = 0 : i64, scratch_operands = 0 : i64, tpu.core_type = #tpu.core_type<tc>, window_params = [{pipeline_mode = #tpu.pipeline_mode<synchronous>, transform_indices = @transform_0, window_bounds = array<i64: 16, 64>}, {pipeline_mode = #tpu.pipeline_mode<synchronous>, transform_indices = @transform_1, window_bounds = array<i64: 64, 128>}, {pipeline_mode = #tpu.pipeline_mode<synchronous>, transform_indices = @transform_2, window_bounds = array<i64: 128, 128>}, {pipeline_mode = #tpu.pipeline_mode<synchronous>, transform_indices = @transform_3, window_bounds = array<i64: 128, 128>}, {pipeline_mode = #tpu.pipeline_mode<synchronous>, transform_indices = @transform_4, window_bounds = array<i64: 8, 128>}, {pipeline_mode = #tpu.pipeline_mode<synchronous>, transform_indices = @transform_5, window_bounds = array<i64: 16, 128>}]} {
    %c0 = arith.constant 0 : index
    %c0_0 = arith.constant 0 : index
    %0 = vector.load %arg1[%c0, %c0_0] : memref<16x64xf32, #tpu.memory_space<vmem>>, vector<16x64xf32>
    %c0_1 = arith.constant 0 : index
    %c0_2 = arith.constant 0 : index
    %1 = vector.load %arg5[%c0_1, %c0_2] : memref<8x128xf32, #tpu.memory_space<vmem>>, vector<1x128xf32>
    %c1 = arith.constant 1 : index
    %c0_3 = arith.constant 0 : index
    %2 = vector.load %arg5[%c1, %c0_3] : memref<8x128xf32, #tpu.memory_space<vmem>>, vector<1x128xf32>
    %c2 = arith.constant 2 : index
    %c0_4 = arith.constant 0 : index
    %3 = vector.load %arg5[%c2, %c0_4] : memref<8x128xf32, #tpu.memory_space<vmem>>, vector<1x128xf32>
    %c3 = arith.constant 3 : index
    %c0_5 = arith.constant 0 : index
    %4 = vector.load %arg5[%c3, %c0_5] : memref<8x128xf32, #tpu.memory_space<vmem>>, vector<1x128xf32>
    %c4 = arith.constant 4 : index
    %c0_6 = arith.constant 0 : index
    %5 = vector.load %arg5[%c4, %c0_6] : memref<8x128xf32, #tpu.memory_space<vmem>>, vector<1x128xf32>
    %c0_7 = arith.constant 0 : index
    %c0_8 = arith.constant 0 : index
    %6 = vector.load %arg2[%c0_7, %c0_8] : memref<64x128xf32, #tpu.memory_space<vmem>>, vector<64x128xf32>
    %cst = arith.constant dense<0.000000e+00> : vector<16x128xf32>
    %7 = tpu.matmul %0, %6, %cst {dimension_numbers = #tpu.dot_dimension_numbers<[1], [0], [0], [1], [0, 0, 1, 1], [], []>} : vector<16x64xf32>, vector<64x128xf32>, vector<16x128xf32> -> vector<16x128xf32>
    %8 = vector.broadcast %1 : vector<1x128xf32> to vector<16x128xf32>
    %9 = arith.addf %7, %8 : vector<16x128xf32>
    %cst_9 = arith.constant 0.000000e+00 : f32
    %10 = vector.broadcast %cst_9 : f32 to vector<16x128xf32>
    %11 = arith.cmpf ogt, %9, %10 : vector<16x128xf32>
    %12 = vector.broadcast %2 : vector<1x128xf32> to vector<16x128xf32>
    %13 = arith.mulf %12, %9 : vector<16x128xf32>
    %14 = arith.select %11, %9, %13 : vector<16x128xi1>, vector<16x128xf32>
    %c0_10 = arith.constant 0 : index
    %c0_11 = arith.constant 0 : index
    %15 = vector.load %arg3[%c0_10, %c0_11] : memref<128x128xf32, #tpu.memory_space<vmem>>, vector<128x128xf32>
    %cst_12 = arith.constant dense<0.000000e+00> : vector<16x128xf32>
    %16 = tpu.matmul %14, %15, %cst_12 {dimension_numbers = #tpu.dot_dimension_numbers<[1], [0], [0], [1], [0, 0, 1, 1], [], []>} : vector<16x128xf32>, vector<128x128xf32>, vector<16x128xf32> -> vector<16x128xf32>
    %17 = vector.broadcast %3 : vector<1x128xf32> to vector<16x128xf32>
    %18 = arith.addf %16, %17 : vector<16x128xf32>
    %cst_13 = arith.constant 0.000000e+00 : f32
    %19 = vector.broadcast %cst_13 : f32 to vector<16x128xf32>
    %20 = arith.cmpf ogt, %18, %19 : vector<16x128xf32>
    %21 = vector.broadcast %4 : vector<1x128xf32> to vector<16x128xf32>
    %22 = arith.mulf %21, %18 : vector<16x128xf32>
    %23 = arith.select %20, %18, %22 : vector<16x128xi1>, vector<16x128xf32>
    %c0_14 = arith.constant 0 : index
    %c0_15 = arith.constant 0 : index
    %24 = vector.load %arg4[%c0_14, %c0_15] : memref<128x128xf32, #tpu.memory_space<vmem>>, vector<128x128xf32>
    %cst_16 = arith.constant dense<0.000000e+00> : vector<16x128xf32>
    %25 = tpu.matmul %23, %24, %cst_16 {dimension_numbers = #tpu.dot_dimension_numbers<[1], [0], [0], [1], [0, 0, 1, 1], [], []>} : vector<16x128xf32>, vector<128x128xf32>, vector<16x128xf32> -> vector<16x128xf32>
    %26 = vector.broadcast %5 : vector<1x128xf32> to vector<16x128xf32>
    %27 = arith.addf %25, %26 : vector<16x128xf32>
    %28 = arith.negf %27 : vector<16x128xf32>
    %29 = math.exp %28 : vector<16x128xf32>
    %cst_17 = arith.constant 1.000000e+00 : f32
    %30 = vector.broadcast %cst_17 : f32 to vector<16x128xf32>
    %31 = arith.addf %30, %29 : vector<16x128xf32>
    %32 = arith.divf %30, %31 : vector<16x128xf32>
    %c0_18 = arith.constant 0 : index
    %c0_19 = arith.constant 0 : index
    %33 = vector.load %arg6[%c0_18, %c0_19] : memref<16x128xf32, #tpu.memory_space<vmem>>, vector<16x128xf32>
    tpu.vector_store %arg6[%c0_18, %c0_19], %32 {strides = array<i32>} : memref<16x128xf32, #tpu.memory_space<vmem>>, vector<16x128xf32>,
    return
  }
  func.func @transform_0(%arg0: i32) -> (i32, i32) {
    %c0_i32 = arith.constant 0 : i32
    %c0_i32_0 = arith.constant 0 : i32
    %c0_i32_1 = arith.constant 0 : i32
    return %c0_i32, %c0_i32_0 : i32, i32
  }
  func.func @transform_1(%arg0: i32) -> (i32, i32) {
    %c0_i32 = arith.constant 0 : i32
    %c0_i32_0 = arith.constant 0 : i32
    %c0_i32_1 = arith.constant 0 : i32
    return %c0_i32, %c0_i32_0 : i32, i32
  }
  func.func @transform_2(%arg0: i32) -> (i32, i32) {
    %c0_i32 = arith.constant 0 : i32
    %c0_i32_0 = arith.constant 0 : i32
    %c0_i32_1 = arith.constant 0 : i32
    return %c0_i32, %c0_i32_0 : i32, i32
  }
  func.func @transform_3(%arg0: i32) -> (i32, i32) {
    %c0_i32 = arith.constant 0 : i32
    %c0_i32_0 = arith.constant 0 : i32
    %c0_i32_1 = arith.constant 0 : i32
    return %c0_i32, %c0_i32_0 : i32, i32
  }
  func.func @transform_4(%arg0: i32) -> (i32, i32) {
    %c0_i32 = arith.constant 0 : i32
    %c0_i32_0 = arith.constant 0 : i32
    %c0_i32_1 = arith.constant 0 : i32
    return %c0_i32, %c0_i32_0 : i32, i32
  }
  func.func @transform_5(%arg0: i32) -> (i32, i32) {
    %c0_i32 = arith.constant 0 : i32
    %c0_i32_0 = arith.constant 0 : i32
    %c0_i32_1 = arith.constant 0 : i32
    return %c0_i32, %c0_i32_0 : i32, i32
  }
}

</mosaic_0001>

<bundles_post_ra>
// kernel: mul.5
= control target key start
LH: loop header
LB: loop body
LE: loop exit
PB: predicated region body
PF: predicated region fallthrough
CT: control target
= control target key end

     0   :  { %s188_s0 = inlined_call_operand.vmem [shape: f32[64,128], index: 0, kind: input, shape index: {}]   ;;  %s189_s1 = inlined_call_operand.vmem [shape: f32[64,128], index: 1, kind: input, shape index: {}]   ;;  %s190_s2 = inlined_call_operand.vmem [shape: f32[64,128], index: 2, kind: output, shape index: {}]  }
   0x1   :  { %v3_v0 = vld [vmem:[%s188_s0] sm:$0xff]  ;;  %v80_v2 = vld [vmem:[%s188_s0 + $0x8] sm:$0xff]  ;;  %v83_v5 = vld [vmem:[%s188_s0 + $0x10] sm:$0xff] }
   0x2   :  { %v4_v1 = vld [vmem:[%s189_s1] sm:$0xff]  ;;  %v81_v4 = vld [vmem:[%s189_s1 + $0x8] sm:$0xff]  ;;  %v84_v6 = vld [vmem:[%s189_s1 + $0x10] sm:$0xff] }
   0x3   :  { %v7_v3 = vmul.f32 %v4_v1, %v3_v0  ;;  %v16_v7 = vmul.f32 %v81_v4, %v80_v2  ;;  %v26_v8 = vmul.f32 %v84_v6, %v83_v5  ;;  %v86_v9 = vld [vmem:[%s188_s0 + $0x18] sm:$0xff]  ;;  %v89_v11 = vld [vmem:[%s188_s0 + $0x20] sm:$0xff]  ;;  %v92_v14 = vld [vmem:[%s188_s0 + $0x28] sm:$0xff] }
   0x4   :  { %v87_v10 = vld [vmem:[%s189_s1 + $0x18] sm:$0xff]  ;;  %v90_v13 = vld [vmem:[%s189_s1 + $0x20] sm:$0xff]  ;;  %v93_v15 = vld [vmem:[%s189_s1 + $0x28] sm:$0xff] }
   0x5   :  { %9 = vst [vmem:[%s190_s2] sm:$0xff] %v7_v3  ;;  %v36_v12 = vmul.f32 %v87_v10, %v86_v9  ;;  %82 = vst [vmem:[%s190_s2 + $0x8] sm:$0xff] %v16_v7  ;;  %v46_v16 = vmul.f32 %v90_v13, %v89_v11  ;;  %v56_v17 = vmul.f32 %v93_v15, %v92_v14  ;;  %v95_v18 = vld [vmem:[%s188_s0 + $0x30] sm:$0xff]  ;;  %v98_v20 = vld [vmem:[%s188_s0 + $0x38] sm:$0xff] }
   0x6   :  { %85 = vst [vmem:[%s190_s2 + $0x10] sm:$0xff] %v26_v8  ;;  %v96_v19 = vld [vmem:[%s189_s1 + $0x30] sm:$0xff]  ;;  %v99_v22 = vld [vmem:[%s189_s1 + $0x38] sm:$0xff] }
   0x7   :  { %88 = vst [vmem:[%s190_s2 + $0x18] sm:$0xff] %v36_v12  ;;  %v66_v21 = vmul.f32 %v96_v19, %v95_v18  ;;  %91 = vst [vmem:[%s190_s2 + $0x20] sm:$0xff] %v46_v16  ;;  %v76_v23 = vmul.f32 %v99_v22, %v98_v20 }
   0x8   :  { %94 = vst [vmem:[%s190_s2 + $0x28] sm:$0xff] %v56_v17 }
   0x9   :  { %97 = vst [vmem:[%s190_s2 + $0x30] sm:$0xff] %v66_v21  ;;  %100 = vst [vmem:[%s190_s2 + $0x38] sm:$0xff] %v76_v23 }

// kernel: made3d_forward.1
= control target key start
LH: loop header
LB: loop body
LE: loop exit
PB: predicated region body
PF: predicated region fallthrough
CT: control target
= control target key end

     0   :  { %vm39_vm0 = vcmask 523264   ;;  %s760_s1 = inlined_call_operand.vmem [shape: f32[64,128], index: 1, kind: input, shape index: {}]   ;;  %s761_s0 = inlined_call_operand.vmem [shape: f32[16,64], index: 0, kind: input, shape index: {}]   ;;  %s762_s2 = inlined_call_operand.vmem [shape: f32[128,128], index: 2, kind: input, shape index: {}]   ;;  %s763_s3 = inlined_call_operand.vmem [shape: f32[128,128], index: 3, kind: input, shape index: {}]   ;;  %s764_s4 = inlined_call_operand.vmem [shape: f32[8,128], index: 4, kind: input, shape index: {}]   ;;  %s765_s5 = inlined_call_operand.vmem [shape: f32[16,128], index: 5, kind: output, shape index: {}]  }
   0x1   :  { %v27_v0 = vld [vmem:[%s760_s1] sm:$0xff]  ;;  %v28_v1 = vld [vmem:[%s760_s1 + $0x8] sm:$0xff]  ;;  %v29_v2 = vld [vmem:[%s760_s1 + $0x10] sm:$0xff] }
   0x2   :  { %v493_v3 = vpack.c.bf16 %v28_v1, %v27_v0  ;;  %v30_v4 = vld [vmem:[%s760_s1 + $0x18] sm:$0xff]  ;;  %v31_v6 = vld [vmem:[%s760_s1 + $0x20] sm:$0xff]  ;;  %v32_v7 = vld [vmem:[%s760_s1 + $0x28] sm:$0xff] }
   0x3   :  { %v497_v5 = vpack.c.bf16 %v30_v4, %v29_v2  ;;  %v20_v8 = vld [vmem:[%s761_s0] sm:$0xff]  ;;  %v132_v10 = vld [vmem:[%s762_s2 + $0x8] sm:$0xff]  ;;  %v133_v12 = vld [vmem:[%s762_s2 + $0x10] sm:$0xff]  ;;  %v501_v14 = vpack.c.bf16 %v32_v7, %v31_v6 }
   0x4   :  { %494 = vmatprep.subr.bf16.mxu0 %v493_v3  ;;  %420 = vmatprep.mubr.msk.f32.mxu0 %vm39_vm0, %v20_v8  ;;  %v131_v9 = vld [vmem:[%s762_s2] sm:$0xff]  ;;  %v134_v13 = vld [vmem:[%s762_s2 + $0x18] sm:$0xff]  ;;  %v136_v17 = vld [vmem:[%s762_s2 + $0x28] sm:$0xff] }
   0x5   :  { %496 = vmatpush3.bf16.msra.mxu0 %v493_v3  ;;  %v509_v11 = vpack.c.bf16 %v132_v10, %v131_v9  ;;  %v513_v15 = vpack.c.bf16 %v134_v13, %v133_v12  ;;  %v135_v16 = vld [vmem:[%s762_s2 + $0x20] sm:$0xff]  ;;  %v33_v18 = vld [vmem:[%s760_s1 + $0x30] sm:$0xff]  ;;  %v34_v19 = vld [vmem:[%s760_s1 + $0x38] sm:$0xff] }
   0x6   :  { %498 = vmatprep.subr.bf16.mxu0 %v497_v5  ;;  %v517_v20 = vpack.c.bf16 %v136_v17, %v135_v16  ;;  %v505_v21 = vpack.c.bf16 %v34_v19, %v33_v18  ;;  %v137_v22 = vld [vmem:[%s762_s2 + $0x30] sm:$0xff]  ;;  %v138_v23 = vld [vmem:[%s762_s2 + $0x38] sm:$0xff]  ;;  %v139_v25 = vld [vmem:[%s762_s2 + $0x40] sm:$0xff] }
   0x7   :  { %510 = vmatprep.subr.bf16.mxu1 %v509_v11  ;;  %v521_v24 = vpack.c.bf16 %v138_v23, %v137_v22  ;;  %v140_v26 = vld [vmem:[%s762_s2 + $0x48] sm:$0xff]  ;;  %v141_v29 = vld [vmem:[%s762_s2 + $0x50] sm:$0xff]  ;;  %v142_v30 = vld [vmem:[%s762_s2 + $0x58] sm:$0xff] }
   0x8   :  { %512 = vmatpush3.bf16.msra.mxu1 %v509_v11  ;;  %v21_v27 = vld [vmem:[%s761_s0 + $0x8] sm:$0xff]  ;;  %v525_v28 = vpack.c.bf16 %v140_v26, %v139_v25  ;;  %v529_v31 = vpack.c.bf16 %v142_v30, %v141_v29  ;;  %v143_v32 = vld [vmem:[%s762_s2 + $0x60] sm:$0xff]  ;;  %v145_v35 = vld [vmem:[%s762_s2 + $0x70] sm:$0xff] }
   0x9   :  { %500 = vmatpush3.bf16.msra.mxu0 %v497_v5  ;;  %514 = vmatprep.subr.bf16.mxu1 %v513_v15  ;;  %v144_v33 = vld [vmem:[%s762_s2 + $0x68] sm:$0xff]  ;;  %v146_v36 = vld [vmem:[%s762_s2 + $0x78] sm:$0xff]  ;;  %v236_v38 = vld [vmem:[%s763_s3] sm:$0xff] }
   0xa   :  { %502 = vmatprep.subr.bf16.mxu0 %v501_v14  ;;  %v533_v34 = vpack.c.bf16 %v144_v33, %v143_v32  ;;  %v537_v37 = vpack.c.bf16 %v146_v36, %v145_v35  ;;  %v237_v39 = vld [vmem:[%s763_s3 + $0x8] sm:$0xff]  ;;  %v238_v40 = vld [vmem:[%s763_s3 + $0x10] sm:$0xff]  ;;  %v239_v42 = vld [vmem:[%s763_s3 + $0x18] sm:$0xff] }
   0xb   :  { %v541_v41 = vpack.c.bf16 %v237_v39, %v236_v38  ;;  %v545_v43 = vpack.c.bf16 %v239_v42, %v238_v40  ;;  %v240_v44 = vld [vmem:[%s763_s3 + $0x20] sm:$0xff]  ;;  %v241_v45 = vld [vmem:[%s763_s3 + $0x28] sm:$0xff]  ;;  %v242_v47 = vld [vmem:[%s763_s3 + $0x30] sm:$0xff] }
   0xc   :  { %516 = vmatpush3.bf16.msra.mxu1 %v513_v15  ;;  %v549_v46 = vpack.c.bf16 %v241_v45, %v240_v44  ;;  %v243_v48 = vld [vmem:[%s763_s3 + $0x38] sm:$0xff]  ;;  %v244_v50 = vld [vmem:[%s763_s3 + $0x40] sm:$0xff]  ;;  %v245_v51 = vld [vmem:[%s763_s3 + $0x48] sm:$0xff] }
   0xd   :  { %504 = vmatpush3.bf16.msra.mxu0 %v501_v14  ;;  %518 = vmatprep.subr.bf16.mxu1 %v517_v20  ;;  %v553_v49 = vpack.c.bf16 %v243_v48, %v242_v47  ;;  %v557_v52 = vpack.c.bf16 %v245_v51, %v244_v50  ;;  %v246_v53 = vld [vmem:[%s763_s3 + $0x50] sm:$0xff]  ;;  %v247_v54 = vld [vmem:[%s763_s3 + $0x58] sm:$0xff]  ;;  %v349_v56 = vld [vmem:[%s764_s4] ss:$0 sm:$0xff] }
   0xe   :  { %506 = vmatprep.subr.bf16.mxu0 %v505_v21  ;;  %v561_v55 = vpack.c.bf16 %v247_v54, %v246_v53  ;;  %v352_v57 = vld [vmem:[%s764_s4 + $0x1] ss:$0 sm:$0xff]  ;;  %v249_v3 = vld [vmem:[%s763_s3 + $0x68] sm:$0xff]  ;;  %v250_v5 = vld [vmem:[%s763_s3 + $0x70] sm:$0xff] }
   0xf   :  { %v248_v2 = vld [vmem:[%s763_s3 + $0x60] sm:$0xff]  ;;  %v251_v6 = vld [vmem:[%s763_s3 + $0x78] sm:$0xff] }
  0x10   :  { %520 = vmatpush3.bf16.msra.mxu1 %v517_v20  ;;  %v565_v4 = vpack.c.bf16 %v249_v3, %v248_v2  ;;  %v569_v7 = vpack.c.bf16 %v251_v6, %v250_v5  ;;  %v353_v8 = vld [vmem:[%s764_s4 + $0x2] ss:$0 sm:$0xff]  ;;  %v354_v9 = vld [vmem:[%s764_s4 + $0x3] ss:$0 sm:$0xff]  ;;  %v355_v18 = vld [vmem:[%s764_s4 + $0x4] ss:$0 sm:$0xff] }
  0x11   :  { %508 = vmatpush3.bf16.msra.mxu0 %v505_v21  ;;  %522 = vmatprep.subr.bf16.mxu1 %v521_v24 }
  0x12   :  { %542 = vmatprep.subr.bf16.mxu0 %v541_v41 }
  0x14   :  { %421 = vmatmul.mubr.msk.f32.vlgmr.msra.gmra.mrb[0].mxu0 %vm39_vm0, %v21_v27  ;;  %524 = vmatpush3.bf16.msra.mxu1 %v521_v24 }
  0x15   :  { %526 = vmatprep.subr.bf16.mxu1 %v525_v28  ;;  %544 = vmatpush3.bf16.msra.mxu0 %v541_v41 }
  0x16   :  { %546 = vmatprep.subr.bf16.mxu0 %v545_v43 }
  0x18   :  { %528 = vmatpush3.bf16.msra.mxu1 %v525_v28 }
  0x19   :  { %530 = vmatprep.subr.bf16.mxu1 %v529_v31  ;;  %548 = vmatpush3.bf16.msra.mxu0 %v545_v43 }
  0x1a   :  { %550 = vmatprep.subr.bf16.mxu0 %v549_v46 }
  0x1c   :  { %532 = vmatpush3.bf16.msra.mxu1 %v529_v31 }
  0x1d   :  { %534 = vmatprep.subr.bf16.mxu1 %v533_v34  ;;  %552 = vmatpush3.bf16.msra.mxu0 %v549_v46 }
  0x1e   :  { %554 = vmatprep.subr.bf16.mxu0 %v553_v49 }
  0x20   :  { %536 = vmatpush3.bf16.msra.mxu1 %v533_v34 }
  0x21   :  { %538 = vmatprep.subr.bf16.mxu1 %v537_v37  ;;  %556 = vmatpush3.bf16.msra.mxu0 %v553_v49 }
  0x22   :  { %558 = vmatprep.subr.bf16.mxu0 %v557_v52 }
  0x24   :  { %540 = vmatpush3.bf16.msra.mxu1 %v537_v37 }
  0x25   :  { %560 = vmatpush3.bf16.msra.mxu0 %v557_v52 }
  0x26   :  { %562 = vmatprep.subr.bf16.mxu0 %v561_v55 }
  0x29   :  { %564 = vmatpush3.bf16.msra.mxu0 %v561_v55 }
  0x2a   :  { %566 = vmatprep.subr.bf16.mxu0 %v565_v4 }
  0x2d   :  { %568 = vmatpush3.bf16.msra.mxu0 %v565_v4 }
  0x2e   :  { %570 = vmatprep.subr.bf16.mxu0 %v569_v7 }
  0x31   :  { %572 = vmatpush3.bf16.msra.mxu0 %v569_v7 }
  0xe7   :  { %v422_v58 = vpop.f32.mrb[0].mxu0 }
  0xe8   :  { %v118_v59 = vadd.f32 %v422_v58, %v349_v56  ;;  %v112_v60 = vpop.f32.mrb[1].mxu0 }
  0xe9   :  { %v113_v61 = vadd.f32 %v349_v56, %v112_v60 }
  0xea   :  { %v128_v62 = vmul.f32 %v352_v57, %v118_v59  ;;  %vm122_vm2 = vcmp.gt.f32.partialorder %v118_v59, 0.0 }
  0xeb   :  { %vm121_vm1 = vcmp.gt.f32.partialorder %v113_v61, 0.0  ;;  %v127_v63 = vmul.f32 %v352_v57, %v113_v61 }
  0xec   :  { %v130_v1 = vsel %vm122_vm2, %v118_v59, %v128_v62 }
  0xed   :  { %v129_v0 = vsel %vm121_vm1, %v113_v61, %v127_v63 }
  0xee   :  { %455 = vmatprep.mubr.f32.mxu1 %v129_v0 }
  0xef   :  { %456 = vmatmul.mubr.f32.vlgmr.msra.gmra.mrb[0].mxu1 %v130_v1 }
 0x1c2   :  { %v457_v10 = vpop.f32.mrb[0].mxu1 }
 0x1c3   :  { %v223_v11 = vadd.f32 %v457_v10, %v353_v8  ;;  %v217_v12 = vpop.f32.mrb[1].mxu1 }
 0x1c4   :  { %v218_v13 = vadd.f32 %v353_v8, %v217_v12 }
 0x1c5   :  { %v233_v14 = vmul.f32 %v354_v9, %v223_v11  ;;  %vm227_vm3 = vcmp.gt.f32.partialorder %v223_v11, 0.0 }
 0x1c6   :  { %v232_v15 = vmul.f32 %v354_v9, %v218_v13  ;;  %vm226_vm4 = vcmp.gt.f32.partialorder %v218_v13, 0.0 }
 0x1c7   :  { %v235_v17 = vsel %vm227_vm3, %v223_v11, %v233_v14 }
 0x1c8   :  { %v234_v16 = vsel %vm226_vm4, %v218_v13, %v232_v15 }
 0x1c9   :  { %490 = vmatprep.mubr.f32.mxu0 %v234_v16 }
 0x1ca   :  { %491 = vmatmul.mubr.f32.vlgmr.msra.gmra.mrb[2].mxu0 %v235_v17 }
 0x29d   :  { %v492_v19 = vpop.f32.mrb[2].mxu0 }
 0x29e   :  { %v328_v20 = vadd.f32 %v492_v19, %v355_v18  ;;  %v322_v21 = vpop.f32.mrb[3].mxu0 }
 0x29f   :  { %v323_v22 = vadd.f32 %v355_v18, %v322_v21 }
 0x2a0   :  { %v357_v23 = vmul.f32 -1.442695, %v328_v20 }
 0x2a1   :  { %v356_v24 = vmul.f32 -1.442695, %v323_v22 }
 0x2a2   :  { %573 = vpow2.f32 %v357_v23 }
 0x2a3   :  { %575 = vpow2.f32 %v356_v24 }
 0x2ac   :  { %v574_v25 = vpop.eup %573 }
 0x2ad   :  { %v576_v26 = vpop.eup %575  ;;  %v338_v27 = vadd.f32 1.0, %v574_v25 }
 0x2ae   :  { %v337_v28 = vadd.f32 1.0, %v576_v26 }
 0x2af   :  { %577 = vrcp.f32 %v338_v27 }
 0x2b0   :  { %579 = vrcp.f32 %v337_v28 }
 0x2b9   :  { %v578_v29 = vpop.eup %577 }
 0x2ba   :  { %v580_v30 = vpop.eup %579  ;;  %344 = vst [vmem:[%s765_s5 + $0x8] sm:$0xff] %v578_v29 }
 0x2bb   :  { %343 = vst [vmem:[%s765_s5] sm:$0xff] %v580_v30 }

</bundles_post_ra>
